<compile_context>
chip_gen: v7x
topology: tpu7x:2x2x1
jax: 0.10.0
libtpu: 0.0.40
codegen_flags: <defaults>
</compile_context>

<pallas_src>
import functools
import math

import jax
import jax.numpy as jnp
import numpy as np
from jax.experimental import pallas as pl
from jax.experimental.pallas import tpu as pltpu


# Taylor coefficients (in t^2) for sin(t)/t (deg 15) and cos(t) (deg 14),
# valid for |t| <= pi.  Max truncation error ~8e-7 (sin) / ~4.3e-6 (cos).
_SIN_C = (1.0, -1.0 / 6.0, 1.0 / 120.0, -1.0 / 5040.0, 1.0 / 362880.0,
          -1.0 / 39916800.0, 1.0 / 6227020800.0, -1.0 / 1307674368000.0)
_COS_C = (1.0, -1.0 / 2.0, 1.0 / 24.0, -1.0 / 720.0, 1.0 / 40320.0,
          -1.0 / 3628800.0, 1.0 / 479001600.0, -1.0 / 87178291200.0)
_TWO_PI = 2.0 * math.pi


def _poly_in_t2(t2, coeffs):
    p = jnp.float32(coeffs[-1])
    for c in coeffs[-2::-1]:
        p = p * t2 + jnp.float32(c)
    return p


def _gfft_kernel(x_ref, bt_ref, o_ref, *, mapping_size, slab):
    # x_ref:  [C, T]    input rows for this (batch, row-tile) grid point
    # bt_ref: [M, C]    B^T (unscaled; 2*pi lives in the shared reduction)
    # o_ref:  [2M, T]   sin rows on top, cos rows below
    x = x_ref[...]

    def do_slab(m0):
        bt = bt_ref[pl.ds(m0, slab), :]
        # y = B^T x on the MXU (otherwise idle); HIGHEST keeps f32-level
        # accuracy for the tiny K=C contraction.
        y = jnp.dot(bt, x, preferred_element_type=jnp.float32,
                    precision=jax.lax.Precision.HIGHEST)
        # Shared range reduction: sin/cos(2*pi*y) == sin/cos(2*pi*r),
        # r = y - round(y) in [-0.5, 0.5)  (subtraction is exact).
        r = y - jnp.floor(y + 0.5)
        t = jnp.float32(_TWO_PI) * r             # theta in [-pi, pi)
        t2 = t * t
        sin_v = t * _poly_in_t2(t2, _SIN_C)
        cos_v = _poly_in_t2(t2, _COS_C)
        o_ref[pl.ds(m0, slab), :] = sin_v.astype(o_ref.dtype)
        o_ref[pl.ds(mapping_size + m0, slab), :] = cos_v.astype(o_ref.dtype)

    n_slabs = mapping_size // slab
    if n_slabs == 1:
        do_slab(0)                               # fully static indexing
    else:
        @pl.loop(0, n_slabs)
        def _(s):
            do_slab(pl.multiple_of(s * slab, slab))


def _pick_slab(mapping_size):
    for s in (64, 32, 16, 8):
        if mapping_size % s == 0:
            return s
    return mapping_size


def _round_up(x, m):
    return ((x + m - 1) // m) * m


def _choose_tile(batch, r_total, max_tile=1024):
    """Returns (tile_r, r_pad) with tile_r % 128 == 0 and tile_r | r_pad."""
    if r_total > 2 * max_tile:
        r_pad = _round_up(r_total, 512)
        tile = max_tile if r_pad % max_tile == 0 else 512
        return tile, r_pad
    if batch == 1 and r_total >= 256:
        # Guarantee >= 2 grid steps so both v7x TensorCores get work.
        tile = _round_up(-(-r_total // 2), 128)
        return tile, 2 * tile
    tile = _round_up(r_total, 128)
    return tile, tile


def _encode_fused(x3, bt, tile_r, out_dtype):
    """x3: [batch, C, R] f32 with R % tile_r == 0; bt: [M, C] -> [batch, 2M, R]."""
    batch, C, R = x3.shape
    M = bt.shape[0]
    grid_r = R // tile_r
    slab = _pick_slab(M)

    cost = pl.CostEstimate(
        flops=int(batch * R * M * (2 * C + 36)),       # dot + shared trig polys
        transcendentals=0,
        bytes_accessed=int(4 * batch * C * R + 4 * M * C
                           + np.dtype(out_dtype).itemsize * batch * 2 * M * R),
    )

    return pl.pallas_call(
        functools.partial(_gfft_kernel, mapping_size=M, slab=slab),
        out_shape=jax.ShapeDtypeStruct((batch, 2 * M, R), out_dtype),
        grid=(batch, grid_r),
        in_specs=[
            pl.BlockSpec((None, C, tile_r), lambda b, r: (b, 0, r)),
            pl.BlockSpec((M, C), lambda b, r: (0, 0)),
        ],
        out_specs=pl.BlockSpec((None, 2 * M, tile_r), lambda b, r: (b, 0, r)),
        compiler_params=pltpu.CompilerParams(
            dimension_semantics=("parallel", "parallel")),
        cost_estimate=cost,
    )(x3, bt)


class GaussianFourierFeatureTransform:
    """JAX/Pallas port.  wsfeat is a list of (weight, bias) pairs, each
    [batch, in_channels, ...]; returns the same structure encoded to
    [batch, mapping_size*2, ...]."""
    # TODO(synk): the original returns a WeightSpaceFeatures container; we
    # return a plain list of (weight, bias) tuples with identical contents.

    def __init__(self, network_spec, in_channels, mapping_size=256, scale=10,
                 key=None, out_dtype=jnp.float32):
        self.network_spec = network_spec
        self.in_channels = in_channels
        self._mapping_size = mapping_size
        self.out_channels = mapping_size * 2
        self.scale = scale
        # bf16 output halves HBM writeback (v5e write-roofline win) if the
        # consumer tolerates it; default stays f32 for accuracy.
        self.out_dtype = out_dtype
        if key is None:
            key = jax.random.PRNGKey(0)
        # torch.randn((in_channels, mapping_size)) * scale  (deterministic here)
        self._B = jax.random.normal(
            key, (in_channels, mapping_size), jnp.float32) * scale
        # Pre-transposed to [M, C]; 2*pi is NOT folded in (the kernel's shared
        # range reduction needs y = B^T x in "turns").
        self._Bt = jnp.transpose(self._B)

    def _encode_many(self, tensors):
        """Encode a list of [batch, C, ...] tensors with ONE fused launch."""
        batch = tensors[0].shape[0]
        M = self._mapping_size
        flats, metas = [], []
        for t in tensors:
            rest = tuple(t.shape[2:])
            R = int(np.prod(rest)) if rest else 1
            flats.append(jnp.reshape(t, (batch, self.in_channels, R))
                         .astype(jnp.float32))
            metas.append((rest, R))
        x_all = flats[0] if len(flats) == 1 else jnp.concatenate(flats, axis=-1)
        r_total = x_all.shape[-1]
        tile_r, r_pad = _choose_tile(batch, r_total)
        if r_pad != r_total:
            x_all = jnp.pad(x_all, ((0, 0), (0, 0), (0, r_pad - r_total)))
        out_all = _encode_fused(x_all, self._Bt, tile_r, self.out_dtype)
        outs, off = [], 0
        for rest, R in metas:
            piece = out_all[:, :, off:off + R]
            outs.append(jnp.reshape(piece, (batch, 2 * M) + rest))
            off += R
        return outs

    def encode_tensor(self, x):
        return self._encode_many([x])[0]

    def __call__(self, wsfeat):
        tensors = []
        for i in range(len(self.network_spec)):
            weight, bias = wsfeat[i]
            tensors.append(weight)
            tensors.append(bias)
        enc = self._encode_many(tensors)
        return [(enc[2 * i], enc[2 * i + 1])
                for i in range(len(self.network_spec))]


def _encode_ref(x, b_mat):
    """Pure-JAX reference mirroring the PyTorch code exactly."""
    xt = jnp.swapaxes(x, 1, -1)
    p = jnp.matmul(xt, b_mat, precision=jax.lax.Precision.HIGHEST)
    p = 2.0 * math.pi * jnp.swapaxes(p, 1, -1)
    return jnp.concatenate([jnp.sin(p), jnp.cos(p)], axis=1)


if __name__ == "__main__":
    key = jax.random.PRNGKey(0)
    k_b, k_w0, k_b0, k_w1, k_b1 = jax.random.split(key, 5)

    batch = 2
    in_channels = 4          # feature channels of the weight-space features
    mapping_size = 16
    scale = 10
    # network_spec: two "layers"; weights [B, C, n_out, n_in], biases [B, C, n_out]
    network_spec = [(6, 8), (8, 4)]

    w0 = jax.random.normal(k_w0, (batch, in_channels, 8, 6), jnp.float32)
    b0 = jax.random.normal(k_b0, (batch, in_channels, 8), jnp.float32)
    w1 = jax.random.normal(k_w1, (batch, in_channels, 4, 8), jnp.float32)
    b1 = jax.random.normal(k_b1, (batch, in_channels, 4), jnp.float32)
    wsfeat = [(w0, b0), (w1, b1)]

    mod = GaussianFourierFeatureTransform(
        network_spec, in_channels, mapping_size=mapping_size, scale=scale,
        key=k_b)

    out = mod(wsfeat)
    out = jax.block_until_ready(out)

    # check against the pure-JAX reference
    ok = True
    for (w_in, b_in), (w_out, b_out) in zip(wsfeat, out):
        rw = _encode_ref(w_in, mod._B)
        rb = _encode_ref(b_in, mod._B)
        ok &= (w_out.shape == rw.shape) and (b_out.shape == rb.shape)
        ok &= bool(np.allclose(np.asarray(w_out), np.asarray(rw), atol=1e-3))
        ok &= bool(np.allclose(np.asarray(b_out), np.asarray(rb), atol=1e-3))

    if ok:
        print("KERNEL_OK")
    else:
        print("KERNEL_MISMATCH")
</pallas_src>

<mosaic_0001>
module attributes {stable_mosaic.version = 11 : i64} {
  func.func @_gfft_kernel(%arg0: i32, %arg1: i32, %arg2: memref<1x4x128xf32, #tpu.memory_space<vmem>>, %arg3: memref<16x4xf32, #tpu.memory_space<vmem>>, %arg4: memref<1x32x128xf32, #tpu.memory_space<vmem>>) attributes {dimension_semantics = [#tpu.dimension_semantics<parallel>, #tpu.dimension_semantics<parallel>], iteration_bounds = array<i64: 2, 1>, scalar_prefetch = 0 : i64, scratch_operands = 0 : i64, tpu.core_type = #tpu.core_type<tc>, window_params = [{transform_indices = @transform_0, window_bounds = array<i64: 1, 4, 128>}, {pipeline_mode = #tpu.pipeline_mode<synchronous>, transform_indices = @transform_1, window_bounds = array<i64: 16, 4>}, {transform_indices = @transform_2, window_bounds = array<i64: 1, 32, 128>}]} {
    %c0 = arith.constant 0 : index
    %c0_0 = arith.constant 0 : index
    %c0_1 = arith.constant 0 : index
    %0 = vector.load %arg2[%c0, %c0_0, %c0_1] : memref<1x4x128xf32, #tpu.memory_space<vmem>>, vector<1x4x128xf32>
    %1 = vector.shape_cast %0 : vector<1x4x128xf32> to vector<4x128xf32>
    %c0_2 = arith.constant 0 : index
    %c0_3 = arith.constant 0 : index
    %2 = vector.load %arg3[%c0_2, %c0_3] : memref<16x4xf32, #tpu.memory_space<vmem>>, vector<16x4xf32>
    %cst = arith.constant dense<0.000000e+00> : vector<16x128xf32>
    %3 = tpu.matmul %2, %1, %cst {dimension_numbers = #tpu.dot_dimension_numbers<[1], [0], [0], [1], [0, 0, 1, 1], [], []>, precision = #tpu.contract_precision<fp32>} : vector<16x4xf32>, vector<4x128xf32>, vector<16x128xf32> -> vector<16x128xf32>
    %cst_4 = arith.constant 5.000000e-01 : f32
    %4 = vector.broadcast %cst_4 : f32 to vector<16x128xf32>
    %5 = arith.addf %3, %4 : vector<16x128xf32>
    %6 = math.floor %5 : vector<16x128xf32>
    %7 = arith.subf %3, %6 : vector<16x128xf32>
    %cst_5 = arith.constant 6.28318548 : f32
    %8 = vector.broadcast %cst_5 : f32 to vector<16x128xf32>
    %9 = arith.mulf %8, %7 : vector<16x128xf32>
    %10 = arith.mulf %9, %9 : vector<16x128xf32>
    %cst_6 = arith.constant -7.6471636E-13 : f32
    %11 = vector.broadcast %cst_6 : f32 to vector<16x128xf32>
    %12 = arith.mulf %11, %10 : vector<16x128xf32>
    %cst_7 = arith.constant 1.60590444E-10 : f32
    %13 = vector.broadcast %cst_7 : f32 to vector<16x128xf32>
    %14 = arith.addf %12, %13 : vector<16x128xf32>
    %15 = arith.mulf %14, %10 : vector<16x128xf32>
    %cst_8 = arith.constant -2.50521079E-8 : f32
    %16 = vector.broadcast %cst_8 : f32 to vector<16x128xf32>
    %17 = arith.addf %15, %16 : vector<16x128xf32>
    %18 = arith.mulf %17, %10 : vector<16x128xf32>
    %cst_9 = arith.constant 2.75573188E-6 : f32
    %19 = vector.broadcast %cst_9 : f32 to vector<16x128xf32>
    %20 = arith.addf %18, %19 : vector<16x128xf32>
    %21 = arith.mulf %20, %10 : vector<16x128xf32>
    %cst_10 = arith.constant -1.98412701E-4 : f32
    %22 = vector.broadcast %cst_10 : f32 to vector<16x128xf32>
    %23 = arith.addf %21, %22 : vector<16x128xf32>
    %24 = arith.mulf %23, %10 : vector<16x128xf32>
    %cst_11 = arith.constant 0.00833333377 : f32
    %25 = vector.broadcast %cst_11 : f32 to vector<16x128xf32>
    %26 = arith.addf %24, %25 : vector<16x128xf32>
    %27 = arith.mulf %26, %10 : vector<16x128xf32>
    %cst_12 = arith.constant -0.166666672 : f32
    %28 = vector.broadcast %cst_12 : f32 to vector<16x128xf32>
    %29 = arith.addf %27, %28 : vector<16x128xf32>
    %30 = arith.mulf %29, %10 : vector<16x128xf32>
    %cst_13 = arith.constant 1.000000e+00 : f32
    %31 = vector.broadcast %cst_13 : f32 to vector<16x128xf32>
    %32 = arith.addf %30, %31 : vector<16x128xf32>
    %33 = arith.mulf %9, %32 : vector<16x128xf32>
    %cst_14 = arith.constant -1.14707454E-11 : f32
    %34 = vector.broadcast %cst_14 : f32 to vector<16x128xf32>
    %35 = arith.mulf %34, %10 : vector<16x128xf32>
    %cst_15 = arith.constant 2.08767559E-9 : f32
    %36 = vector.broadcast %cst_15 : f32 to vector<16x128xf32>
    %37 = arith.addf %35, %36 : vector<16x128xf32>
    %38 = arith.mulf %37, %10 : vector<16x128xf32>
    %cst_16 = arith.constant -2.755732E-7 : f32
    %39 = vector.broadcast %cst_16 : f32 to vector<16x128xf32>
    %40 = arith.addf %38, %39 : vector<16x128xf32>
    %41 = arith.mulf %40, %10 : vector<16x128xf32>
    %cst_17 = arith.constant 2.48015876E-5 : f32
    %42 = vector.broadcast %cst_17 : f32 to vector<16x128xf32>
    %43 = arith.addf %41, %42 : vector<16x128xf32>
    %44 = arith.mulf %43, %10 : vector<16x128xf32>
    %cst_18 = arith.constant -0.00138888892 : f32
    %45 = vector.broadcast %cst_18 : f32 to vector<16x128xf32>
    %46 = arith.addf %44, %45 : vector<16x128xf32>
    %47 = arith.mulf %46, %10 : vector<16x128xf32>
    %cst_19 = arith.constant 0.0416666679 : f32
    %48 = vector.broadcast %cst_19 : f32 to vector<16x128xf32>
    %49 = arith.addf %47, %48 : vector<16x128xf32>
    %50 = arith.mulf %49, %10 : vector<16x128xf32>
    %cst_20 = arith.constant -5.000000e-01 : f32
    %51 = vector.broadcast %cst_20 : f32 to vector<16x128xf32>
    %52 = arith.addf %50, %51 : vector<16x128xf32>
    %53 = arith.mulf %52, %10 : vector<16x128xf32>
    %cst_21 = arith.constant 1.000000e+00 : f32
    %54 = vector.broadcast %cst_21 : f32 to vector<16x128xf32>
    %55 = arith.addf %53, %54 : vector<16x128xf32>
    %c0_22 = arith.constant 0 : index
    %c0_23 = arith.constant 0 : index
    %c0_24 = arith.constant 0 : index
    %56 = vector.load %arg4[%c0_22, %c0_23, %c0_24] : memref<1x32x128xf32, #tpu.memory_space<vmem>>, vector<1x16x128xf32>
    %57 = vector.shape_cast %56 : vector<1x16x128xf32> to vector<16x128xf32>
    %58 = vector.shape_cast %33 : vector<16x128xf32> to vector<1x16x128xf32>
    tpu.vector_store %arg4[%c0_22, %c0_23, %c0_24], %58 {strides = array<i32>} : memref<1x32x128xf32, #tpu.memory_space<vmem>>, vector<1x16x128xf32>,
    %c0_25 = arith.constant 0 : index
    %c16 = arith.constant 16 : index
    %c0_26 = arith.constant 0 : index
    %59 = vector.load %arg4[%c0_25, %c16, %c0_26] : memref<1x32x128xf32, #tpu.memory_space<vmem>>, vector<1x16x128xf32>
    %60 = vector.shape_cast %59 : vector<1x16x128xf32> to vector<16x128xf32>
    %61 = vector.shape_cast %55 : vector<16x128xf32> to vector<1x16x128xf32>
    tpu.vector_store %arg4[%c0_25, %c16, %c0_26], %61 {strides = array<i32>} : memref<1x32x128xf32, #tpu.memory_space<vmem>>, vector<1x16x128xf32>,
    return
  }
  func.func @transform_0(%arg0: i32, %arg1: i32) -> (i32, i32, i32) {
    %c0_i32 = arith.constant 0 : i32
    %c0_i32_0 = arith.constant 0 : i32
    return %arg0, %c0_i32, %arg1 : i32, i32, i32
  }
  func.func @transform_1(%arg0: i32, %arg1: i32) -> (i32, i32) {
    %c0_i32 = arith.constant 0 : i32
    %c0_i32_0 = arith.constant 0 : i32
    %c0_i32_1 = arith.constant 0 : i32
    return %c0_i32, %c0_i32_0 : i32, i32
  }
  func.func @transform_2(%arg0: i32, %arg1: i32) -> (i32, i32, i32) {
    %c0_i32 = arith.constant 0 : i32
    %c0_i32_0 = arith.constant 0 : i32
    return %arg0, %c0_i32, %arg1 : i32, i32, i32
  }
}

</mosaic_0001>

<bundles_post_ra>
// kernel: tpu_custom_call.1
= control target key start
LH: loop header
LB: loop body
LE: loop exit
PB: predicated region body
PF: predicated region fallthrough
CT: control target
= control target key end

     0   :  { %7 = vsyncpa [#allocation3], 0  ;;  %s1190_s0 = inlined_call_operand.vmem [shape: f32[2,4,128], index: 0, kind: input, shape index: {}]   ;;  %s1191_s1 = inlined_call_operand.vmem [shape: f32[16,4], index: 1, kind: input, shape index: {}]   ;;  %s1192_s2 = inlined_call_operand.hbm [shape: f32[2,32,128], index: 2, kind: output, shape index: {}]  }
   0x1   :  { %9 = vsyncpa [#allocation3 + $0x1], 0  ;;  %s1055_s9 = smov 0   ;;  %s1057_s10 = smov 0  }
   0x2   :  { %s1059_s11 = smov 0   ;;  %s1061_s12 = smov 0  }
   0x3   :  { %s1063_s13 = smov 0   ;;  %s1065_s14 = smov 0  }
   0x4 LB: > { %s829_s15 = sadd.s32 4294967295, %s1035_s14   ;;  %s830_s16 = sadd.s32 4294967294, %s1035_s14   ;;  %s1035_s14 = sphi %s1065_s14, %s15_s14   ;;  %s1031_s13 = sphi %s1063_s13, %s1199_s13   ;;  %s1027_s12 = sphi %s1061_s12, %s1198_s12   ;;  %s1023_s11 = sphi %s1059_s11, %s1197_s11   ;;  %s1019_s10 = sphi %s1057_s10, %s1196_s10   ;;  %s1015_s9 = sphi %s1055_s9, %s1195_s9  }
   0x5   : > { %s27_s17 = sadd.s32 1, %s1031_s13  ;;  %s85_s18 = sadd.s32 1, %s1023_s11 }
   0x6   : > { %p29_p0 = scmp.ge.s32.totalorder %s27_s17, 2  ;;  %p95_p1 = scmp.ne.s32.totalorder %s1023_s11, %s1019_s10 }
   0x7   : > { %p96_p2 = scmp.eq.s32.totalorder %s829_s15, 1  ;;  %p101_p3 = scmp.ne.s32.totalorder %s1019_s10, %s1015_s9 }
   0x8   : > { %s1201_s17 = smov (%p29_p0, %s27_s17), 0  ;;  %p102_p5 = scmp.eq.s32.totalorder %s830_s16, 1 }
   0x9   : > { %p1095_p4 = por %p96_p2, %p95_p1  ;;  %s80_s20 = ssub.s32 %s1031_s13, %s1201_s17 }
   0xa   : > { %p833_p6 = scmp.ge.s32.totalorder %s1035_s14, 1  ;;  %p83_p7 = scmp.eq.s32.totalorder %s80_s20, 0 }
   0xb   : > { %p1102_p8 = por %p102_p5, %p101_p3  ;;  %p133_p9 = scmp.lt.s32.totalorder %s1035_s14, 3 }
   0xc   : > { %s1108_s22 = scalar_select %p83_p7, %s1023_s11, %s85_s18  }
   0xd   : > { %p134_p10 = pnand %p833_p6, %p133_p9 }
   0xe   : > { %p157_p11 = scmp.lt.s32.totalorder (!%p134_p10), %s1027_s12, 1  ;;  %v165_v0 = vld [vmem:[%s1191_s1] sm:$0xff] (!%p134_p10)  ;;  %v166_v1 = vld [vmem:[%s1191_s1 + $0x8] sm:$0xff] (!%p134_p10)  ;;  %vm167_vm0 = vcmask (!%p134_p10), 31744   ;;  %vm174_vm1 = vcmask (!%p134_p10), 1043456   ;;  %s154_s4 = sand.u32 (!%p134_p10), 1, %s1019_s10  }
   0xf   : > { %137 = sbr.rel (%p134_p10) target bundleno = 319 (0x13f), region = 28  ;;  %v169_v2 = vsel (!%p134_p10), %vm167_vm0, %v165_v0, 0  ;;  %v172_v3 = vsel (!%p134_p10), %vm167_vm0, %v166_v1, 0  ;;  %s834_s5 = sshll.u32 (!%p134_p10), %s154_s4, 5 }
  0x10   : > { %v244_v4 = vand.u32 (!%p134_p10), 4294901760, %v169_v2  ;;  %v254_v5 = vand.u32 (!%p134_p10), 4294901760, %v172_v3  ;;  %s156_s6 = scalar_lea.vmem (!%p134_p10), [#allocation2], %s834_s5  ;;  %s841_s8 = sshll.u32 (!%p134_p10), %s1027_s12, 9 }
  0x11   : > { %s754_s7 = sshll.u32 (!%p134_p10), %s156_s6, 4  ;;  %s1137_s18 = scalar_lea.hbm (!%p134_p10), %s1192_s2, %s841_s8  ;;  %s1139_s7 = int_to_ptr.vmem [resolvable:$true] %s754_s7 }
  0x12   : > { %v245_v6 = vsub.f32 (!%p134_p10), %v169_v2, %v244_v4  ;;  %v255_v7 = vsub.f32 (!%p134_p10), %v172_v3, %v254_v5  ;;  %s957_s20 = scalar_lea.vmem (!%p134_p10), %s1139_s7, 512  ;;  %s1037_s23 = smov (!%p134_p10), [#allocation2]  }
  0x13   : > { %p958_p12 = scmp.ne.s32.totalorder (!%p134_p10), %s1139_s7, %s957_s20  ;;  %s961_s24 = sshll.u32 (!%p134_p10), %s1037_s23, 4  ;;  %s962_s24 = int_to_ptr.vmem [resolvable:$false] %s961_s24 }
  0x14   : > { %v246_v9 = vand.u32 (!%p134_p10), 4294901760, %v245_v6  ;;  %v256_v10 = vand.u32 (!%p134_p10), 4294901760, %v255_v7  ;;  %s963_s25 = scalar_lea.vmem (!%p134_p10), %s962_s24, 1024  ;;  %p964_p1 = scmp.lt.s32.totalorder (!%p134_p10), %s1139_s7, %s962_s24 }
  0x15   : > { %p959_p13 = pnand (!%p134_p10), %p958_p12, %p1095_p4  ;;  %p965_p2 = scmp.lt.s32.totalorder (!%p134_p10), %s963_s25, %s957_s20 }
  0x16   : > { %s158_s27 = scalar_select %p157_p11, %s1027_s12, 1  ;;  %877 = vmatprep.mubr.f32.mxu0 %v246_v9  ;;  %v247_v13 = vsub.f32 %v245_v6, %v246_v9  ;;  %v257_v14 = vsub.f32 %v255_v7, %v256_v10 }
  0x17   : > { %s1144_s12 = scalar_lea.sflag [#allocation3], %s154_s4  ;;  %p960_p0 = pneg %p959_p13 }
  0x18   : > { %s835_s28 = sshll.u32 %s158_s27, 2  ;;  %v248_v15 = vand.u32 4294901760, %v247_v13  ;;  %v258_v16 = vand.u32 4294901760, %v257_v14  ;;  %p966_p3 = por %p965_p2, %p964_p1 }
  0x19   : > { %s163_s3 = scalar_lea.vmem %s1190_s0, %s835_s28 }
  0x1a   : > { %v164_v8 = vld [vmem:[%s163_s3] sm:$0xf]  ;;  %862 = vmatprep.mubr.f32.mxu1 %v248_v15  ;;  %p967_p5 = pnand %p966_p3, %p960_p0 }
  0x1b   : > { %v176_v11 = vsel %vm174_vm1, %v164_v8, 0 }
  0x1c   : > { %v179_v12 = vand.u32 4294901760, %v176_v11 }
  0x1e   : > { %875 = vmatprep.subr.mxu0 %v179_v12  ;;  %860 = vmatprep.subr.mxu1 %v179_v12  ;;  %v266_v17 = vsub.f32 %v176_v11, %v179_v12 }
  0x1f   : > { %876 = vmatpush3.msra.mxu0 %v179_v12  ;;  %861 = vmatpush3.msra.mxu1 %v179_v12 }
  0x20   : > { %878 = vmatmul.mubr.f32.vlgmr.msra.gmra.mrb[0].mxu0 %v256_v10  ;;  %v267_v18 = vand.u32 4294901760, %v266_v17  ;;  %863 = vmatmul.mubr.f32.vlgmr.msra.gmra.mrb[0].mxu1 %v258_v16 }
  0x21   : > { %882 = vmatprep.mubr.f32.mxu0 %v244_v4  ;;  %867 = vmatprep.mubr.f32.mxu1 %v244_v4 }
  0x22   : > { %v268_v19 = vsub.f32 %v266_v17, %v267_v18  ;;  %880 = vmatprep.subr.mxu0 %v267_v18 }
  0x23   : > { %881 = vmatpush3.msra.mxu0 %v267_v18 }
  0x24   : > { %v269_v20 = vand.u32 4294901760, %v268_v19  ;;  %885 = vmatprep.subr.mxu0 %v179_v12 }
  0x26   : > { %865 = vmatprep.subr.mxu1 %v269_v20 }
  0x27   : > { %866 = vmatpush3.msra.mxu1 %v269_v20 }
  0x28   : > { %883 = vmatmul.mubr.f32.vlgmr.msra.gmra.mrb[0].mxu0 %v254_v5  ;;  %870 = vmatprep.subr.mxu1 %v266_v17 }
  0x29   : > { %868 = vmatmul.mubr.f32.vlgmr.msra.gmra.mrb[0].mxu1 %v254_v5  ;;  %886 = vmatpush3.msra.mxu0 %v179_v12 }
  0x2a   : > { %871 = vmatpush3.msra.mxu1 %v266_v17  ;;  %887 = vmatprep.mubr.f32.mxu0 %v244_v4 }
  0x2b   : > { %872 = vmatprep.mubr.f32.mxu1 %v245_v6 }
  0x30   : > { %888 = vmatmul.mubr.f32.vlgmr.msra.gmra.mrb[0].mxu0 %v254_v5 }
  0x31   : > { %873 = vmatmul.mubr.f32.vlgmr.msra.gmra.mrb[0].mxu1 %v255_v7 }
 0x103   : > { %v889_v21 = vpop.f32.mrb[0].mxu0 }
 0x104   : > { %v874_v22 = vpop.f32.mrb[0].mxu1  ;;  %v657_v23 = vpop.f32.mrb[1].mxu0 }
 0x105   : > { %v890_v24 = vadd.f32 %v889_v21, %v874_v22  ;;  %v416_v25 = vpop.f32.mrb[1].mxu1 }
 0x106   : > { %v891_v26 = vadd.f32 %v657_v23, %v416_v25 }
 0x107   : > { %v668_v27 = vadd.f32 0.5, %v890_v24 }
 0x108   : > { %v667_v28 = vadd.f32 0.5, %v891_v26 }
 0x109   : > { %v670_v29 = vfloor.f32 %v668_v27 }
 0x10a   : > { %v669_v30 = vfloor.f32 %v667_v28 }
 0x10b   : > { %v672_v31 = vsub.f32 %v890_v24, %v670_v29 }
 0x10c   : > { %v671_v32 = vsub.f32 %v891_v26, %v669_v30 }
 0x10d   : > { %v1121_v33 = vmul.f32 6.2831855, %v672_v31 }
 0x10e   : > { %v1123_v34 = vmul.f32 6.2831855, %v671_v32 }
 0x10f   : > { %v676_v35 = vmul.f32 %v1121_v33, %v1121_v33 }
 0x110   : > { %v675_v36 = vmul.f32 %v1123_v34, %v1123_v34 }
 0x111   : > { %v678_v37 = vmul.f32 -7.6471636e-13, %v676_v35  ;;  %v708_v38 = vmul.f32 -1.1470745e-11, %v676_v35 }
 0x112   : > { %v677_v39 = vmul.f32 -7.6471636e-13, %v675_v36  ;;  %v707_v40 = vmul.f32 -1.1470745e-11, %v675_v36 }
 0x113   : > { %v680_v41 = vadd.f32 1.6059044e-10, %v678_v37  ;;  %v710_v42 = vadd.f32 2.0876756e-09, %v708_v38 }
 0x114   : > { %v679_v43 = vadd.f32 1.6059044e-10, %v677_v39  ;;  %v709_v44 = vadd.f32 2.0876756e-09, %v707_v40 }
 0x115   : > { %v682_v45 = vmul.f32 %v680_v41, %v676_v35  ;;  %v712_v46 = vmul.f32 %v710_v42, %v676_v35 }
 0x116   : > { %v681_v47 = vmul.f32 %v679_v43, %v675_v36  ;;  %v711_v48 = vmul.f32 %v709_v44, %v675_v36 }
 0x117   : > { %v684_v49 = vadd.f32 -2.5052108e-08, %v682_v45  ;;  %v714_v50 = vadd.f32 -2.755732e-07, %v712_v46 }
 0x118   : > { %v683_v51 = vadd.f32 -2.5052108e-08, %v681_v47  ;;  %v713_v52 = vadd.f32 -2.755732e-07, %v711_v48 }
 0x119   : > { %v686_v53 = vmul.f32 %v684_v49, %v676_v35  ;;  %v716_v54 = vmul.f32 %v714_v50, %v676_v35 }
 0x11a   : > { %v685_v55 = vmul.f32 %v683_v51, %v675_v36  ;;  %v715_v56 = vmul.f32 %v713_v52, %v675_v36 }
 0x11b   : > { %v688_v57 = vadd.f32 2.7557319e-06, %v686_v53  ;;  %v718_v58 = vadd.f32 2.4801588e-05, %v716_v54 }
 0x11c   : > { %v687_v59 = vadd.f32 2.7557319e-06, %v685_v55  ;;  %v717_v60 = vadd.f32 2.4801588e-05, %v715_v56 }
 0x11d   : > { %v690_v61 = vmul.f32 %v688_v57, %v676_v35  ;;  %v720_v62 = vmul.f32 %v718_v58, %v676_v35 }
 0x11e   : > { %v689_v63 = vmul.f32 %v687_v59, %v675_v36  ;;  %v719_v0 = vmul.f32 %v717_v60, %v675_v36 }
 0x11f   : > { %v692_v1 = vadd.f32 -0.0001984127, %v690_v61  ;;  %v722_v2 = vadd.f32 -0.0013888889, %v720_v62 }
 0x120   : > { %v691_v3 = vadd.f32 -0.0001984127, %v689_v63  ;;  %v721_v4 = vadd.f32 -0.0013888889, %v719_v0 }
 0x121   : > { %v694_v5 = vmul.f32 %v692_v1, %v676_v35  ;;  %v724_v6 = vmul.f32 %v722_v2, %v676_v35 }
 0x122   : > { %v693_v7 = vmul.f32 %v691_v3, %v675_v36  ;;  %v723_v8 = vmul.f32 %v721_v4, %v675_v36 }
 0x123   : > { %v696_v9 = vadd.f32 0.008333334, %v694_v5  ;;  %v726_v10 = vadd.f32 0.041666668, %v724_v6 }
 0x124   : > { %v695_v11 = vadd.f32 0.008333334, %v693_v7  ;;  %v725_v12 = vadd.f32 0.041666668, %v723_v8 }
 0x125   : > { %v698_v13 = vmul.f32 %v696_v9, %v676_v35  ;;  %v728_v14 = vmul.f32 %v726_v10, %v676_v35 }
 0x126   : > { %v697_v15 = vmul.f32 %v695_v11, %v675_v36  ;;  %v727_v16 = vmul.f32 %v725_v12, %v675_v36 }
 0x127   : > { %v700_v17 = vadd.f32 -0.16666667, %v698_v13  ;;  %v730_v18 = vadd.f32 -0.5, %v728_v14 }
 0x128   : > { %v699_v19 = vadd.f32 -0.16666667, %v697_v15  ;;  %v729_v20 = vadd.f32 -0.5, %v727_v16 }
 0x129   : > { %v702_v21 = vmul.f32 %v700_v17, %v676_v35  ;;  %v732_v22 = vmul.f32 %v730_v18, %v676_v35 }
 0x12a   : > { %v701_v23 = vmul.f32 %v699_v19, %v675_v36  ;;  %v731_v24 = vmul.f32 %v729_v20, %v675_v36 }
 0x12b   : > { %v704_v25 = vadd.f32 1.0, %v702_v21  ;;  %v734_v26 = vadd.f32 1.0, %v732_v22 }
 0x12c   : > { %v703_v27 = vadd.f32 1.0, %v701_v23  ;;  %v733_v28 = vadd.f32 1.0, %v731_v24 }
 0x12d   : > { %v706_v29 = vmul.f32 %v704_v25, %v1121_v33  ;;  %738 = vst [vmem:[%s156_s6 + $0x18] sm:$0xff] %v734_v26 }
 0x12e   : > { %v705_v30 = vmul.f32 %v703_v27, %v1123_v34  ;;  %737 = vst [vmem:[%s156_s6 + $0x10] sm:$0xff] %v733_v28 }
 0x12f   : > { %736 = vst [vmem:[%s156_s6 + $0x8] sm:$0xff] %v706_v29 }
 0x130   : > { %735 = vst [vmem:[%s156_s6] sm:$0xff] %v705_v30 }
 0x131   : > { %970 = shalt.err (!%p967_p5)
}
 0x132   : > { %s971_s26 = scalar_lea.hbm %s1137_s18, 512  ;;  %s975_s29 = scalar_lea.hbm %s1192_s2, 1024 }
 0x133   : > { %p972_p6 = scmp.ne.s32.totalorder %s1137_s18, %s971_s26  ;;  %p976_p10 = scmp.lt.u32.totalorder %s1137_s18, %s1192_s2 }
 0x134   : > { %p977_p11 = scmp.lt.u32.totalorder %s975_s29, %s971_s26  ;;  %p979_p13 = scmp.lt.u32.totalorder %s971_s26, %s1137_s18 }
 0x135   : > { %p973_p7 = pnand %p972_p6, %p1095_p4 }
 0x136   : > { %p978_p12 = por %p977_p11, %p976_p10 }
 0x137   : > { %p974_p9 = pneg %p973_p7 }
 0x138   : > { %p980_p0 = por %p979_p13, %p978_p12 }
 0x13a   : > { %p981_p1 = pnand %p980_p0, %p974_p9 }
 0x13c   : > { %984 = shalt.err (!%p981_p1)
}
 0x13d   : > { %s1038_s4 = smov 128   ;;  %s1039_s5 = smov 8  }
 0x13e   : > { %900 = dma.vmem_to_hbm [thread:$0]  (%p1095_p4), %s1139_s7, 512, %s1137_s18, %s1144_s12, %s1038_s4, %s1038_s4, %s1039_s5  }
 0x13f PF: > { %p906_p2 = scmp.ge.s32.totalorder %s1035_s14, 2  ;;  %s769_s6 = sand.u32 1, %s1015_s9  }
 0x140   : > { %s770_s8 = scalar_lea.sflag [#allocation3], %s769_s6 }
 0x141   : > { %p903_p3 = pnand %p906_p2, %p1102_p8 }
 0x143   : > { %1010 = dma.done.wait (!%p903_p3), %s770_s8, 512  }
 0x144   : > { %1012 = vsyncadd (!%p903_p3), %s770_s8, 4294966784  ;;  %s15_s14 = sadd.s32 1, %s1035_s14   ;;  %s1195_s9 = smov %s1019_s10 }
 0x145   : > { %p12_p5 = scmp.ge.s32.totalorder %s15_s14, 4   ;;  %s1196_s10 = smov %s1023_s11 }
 0x146   : > { %s1197_s11 = smov %s1108_s22  ;;  %s1198_s12 = smov %s1031_s13 }
 0x147   : > { %s1199_s13 = smov %s1201_s17  ;;  %14 = sbr.rel (!%p12_p5) target bundleno = 4 (0x4), region = 63 }
 0x14e   :  { %775 = vsyncpa [#allocation3], 1 }
 0x14f   :  { %777 = vsyncpa [#allocation3 + $0x1], 1 }

</bundles_post_ra>
